<compile_context>
chip_gen: v6e
topology: v6e:2x2x1
jax: 0.10.0
libtpu: 0.0.40
codegen_flags: <defaults>
</compile_context>

<pallas_src>
import functools

import jax
import jax.numpy as jnp
from jax.experimental import pallas as pl
from jax.experimental.pallas import tpu as pltpu


def _label_smoothing_kernel(pred_ref, tgt_ref, out_ref, *,
                            smoothing: float, classes: int,
                            total_n: int, tile_m: int):
    """Per tile: smoothed CE summed over valid rows, written as an (8,128) block."""
    i = pl.program_id(0)

    x = pred_ref[...].astype(jnp.float32)          # (tile_m, C)
    tgt = tgt_ref[...]                             # (tile_m, 1) int32

    # Numerically stable log-sum-exp over the class (lane) axis.
    m = jnp.max(x, axis=-1, keepdims=True)
    lse = jnp.log(jnp.sum(jnp.exp(x - m), axis=-1, keepdims=True)) + m   # (tile_m, 1)

    conf = jnp.float32(1.0 - smoothing)
    off = jnp.float32(smoothing / (classes - 1)) if classes > 1 else jnp.float32(0.0)

    # Fused weighted reduction (single lane reduce):
    #   loss_row = -sum_c w_c * (x_c - lse) = lse - sum_c w_c * x_c
    # with w_c = conf at the target class, off elsewhere (sum_c w_c == 1).
    cls_ids = jax.lax.broadcasted_iota(jnp.int32, x.shape, 1)
    w = jnp.where(cls_ids == tgt, conf, off)
    per_row = lse - jnp.sum(w * x, axis=-1, keepdims=True)               # (tile_m, 1)

    # Select-based mask for rows beyond N on the (possibly partial) last tile.
    row_ids = i * tile_m + jax.lax.broadcasted_iota(jnp.int32, per_row.shape, 0)
    per_row = jnp.where(row_ids < total_n, per_row, 0.0)

    # Per-tile partial sum, stored as a dense (8, 128) block (host reads [0, 0]).
    tile_sum = jnp.sum(per_row, axis=0, keepdims=True)                   # (1, 1)
    out_ref[0] = jnp.broadcast_to(tile_sum, (8, 128))


def _vmem_capacity_bytes(default=64 << 20):
    """Physical VMEM per TensorCore; conservative 64 MiB fallback (v7x-safe)."""
    try:
        cap = getattr(pltpu.get_tpu_info(), "vmem_capacity_bytes", None)
        if cap:
            return int(cap)
    except Exception:
        pass
    return default


def _choose_tile_m(n, c, itemsize, vmem_capacity_bytes):
    """Row tile sized from a per-row VMEM footprint model, multiple of the sublane pack."""
    mult = 8 if itemsize >= 4 else (16 if itemsize == 2 else 32)
    # Per-row footprint: double-buffered pred tile + ~4 live full-width f32/i32
    # temporaries + lane-padded (tile_m, 1) blocks (target double-buffer and
    # per-row f32 intermediates spilled to VMEM at 128-lane padding).
    per_row = 2 * c * itemsize + 4 * c * 4 + 8 * 128 * 4
    budget = int(vmem_capacity_bytes * 0.4)            # leave ample headroom
    tm = max(mult, (budget // per_row) // mult * mult)
    tm = min(tm, 32768)                                 # soft cap on rows/step
    n_pad = -(-n // mult) * mult
    tm = min(tm, n_pad)                                 # don't over-allocate for small N
    # Prefer >= 2 grid steps when possible so v7x's two TensorCores both get
    # work (one extra ~0.35us step on single-TC parts is negligible).
    if n_pad >= 2 * mult and tm >= n_pad:
        tm = max(mult, -(-(n_pad // 2) // mult) * mult)
    return int(tm)


def label_smoothing_loss(pred, target, *, classes, smoothing=0.0, tile_m=None):
    """pred: (N, C) float (f32 or bf16); target: (N,) int. Returns scalar f32 loss."""
    n, c = pred.shape
    assert c == classes
    itemsize = jnp.dtype(pred.dtype).itemsize
    vmem_cap = _vmem_capacity_bytes()
    if tile_m is None:
        tile_m = _choose_tile_m(n, c, itemsize, vmem_cap)
    tile_m = int(tile_m)
    num_tiles = int(pl.cdiv(n, tile_m))

    tgt2d = target.reshape(n, 1).astype(jnp.int32)

    kernel = functools.partial(
        _label_smoothing_kernel,
        smoothing=float(smoothing), classes=int(c),
        total_n=int(n), tile_m=tile_m)

    # VMEM budget from the same per-row footprint model + fixed margin,
    # capped at ~60% of physical VMEM (safe on v7x's 64 MiB per TC).
    per_row_bytes = 2 * c * itemsize + 4 * c * 4 + 8 * 128 * 4
    needed = tile_m * per_row_bytes + (4 << 20)
    vmem_limit = int(min(max(needed, 16 << 20), int(vmem_cap * 0.6)))

    cost = pl.CostEstimate(
        flops=6 * n * c,
        transcendentals=n * c + n,                       # exp over tile + log per row
        bytes_accessed=n * c * itemsize + n * 4 + num_tiles * 8 * 128 * 4)

    partials = pl.pallas_call(
        kernel,
        out_shape=jax.ShapeDtypeStruct((num_tiles, 8, 128), jnp.float32),
        grid_spec=pltpu.PrefetchScalarGridSpec(
            num_scalar_prefetch=0,
            grid=(num_tiles,),
            in_specs=[
                pl.BlockSpec((tile_m, c), lambda i: (i, 0)),      # pred row tile
                pl.BlockSpec((tile_m, 1), lambda i: (i, 0)),      # target row tile
            ],
            out_specs=pl.BlockSpec((1, 8, 128), lambda i: (i, 0, 0)),  # per-tile partial
        ),
        compiler_params=pltpu.CompilerParams(
            dimension_semantics=("parallel",),   # independent tiles -> megacore on v7x
            vmem_limit_bytes=vmem_limit,
        ),
        cost_estimate=cost,
    )(pred, tgt2d)

    # Tiny final reduction outside the kernel (num_tiles elements).
    return jnp.sum(partials[:, 0, 0]) / jnp.float32(n)


def _reference(pred, target, classes, smoothing):
    logp = jax.nn.log_softmax(pred.astype(jnp.float32), axis=-1)
    off = smoothing / (classes - 1)
    true_dist = jnp.full_like(logp, off)
    true_dist = true_dist.at[jnp.arange(pred.shape[0]), target].set(1.0 - smoothing)
    return jnp.mean(jnp.sum(-true_dist * logp, axis=-1))


if __name__ == "__main__":
    C = 32
    smoothing = 0.1
    key = jax.random.PRNGKey(0)
    k1, k2, k3, k4 = jax.random.split(key, 4)

    # Case 1: N divisible by an explicit small tile (multi-step grid).
    N1 = 64
    pred1 = jax.random.normal(k1, (N1, C), dtype=jnp.float32)
    tgt1 = jax.random.randint(k2, (N1,), 0, C, dtype=jnp.int32)
    loss1 = jax.block_until_ready(
        label_smoothing_loss(pred1, tgt1, classes=C, smoothing=smoothing, tile_m=16))
    ref1 = _reference(pred1, tgt1, C, smoothing)
    assert jnp.allclose(loss1, ref1, atol=1e-5, rtol=1e-4), (loss1, ref1)

    # Case 2: N NOT divisible by the auto-chosen tile (exercises edge-tile mask
    # and the auto tile-size / VMEM-budget path).
    N2 = 50
    pred2 = jax.random.normal(k3, (N2, C), dtype=jnp.float32)
    tgt2 = jax.random.randint(k4, (N2,), 0, C, dtype=jnp.int32)
    loss2 = jax.block_until_ready(
        label_smoothing_loss(pred2, tgt2, classes=C, smoothing=smoothing))
    ref2 = _reference(pred2, tgt2, C, smoothing)
    assert jnp.allclose(loss2, ref2, atol=1e-5, rtol=1e-4), (loss2, ref2)

    print("KERNEL_OK")
</pallas_src>

<mosaic_0001>
module attributes {stable_mosaic.version = 11 : i64} {
  func.func @_label_smoothing_kernel(%arg0: i32, %arg1: memref<16x32xf32, #tpu.memory_space<vmem>>, %arg2: memref<16x1xi32, #tpu.memory_space<vmem>>, %arg3: memref<1x8x128xf32, #tpu.memory_space<vmem>>) attributes {dimension_semantics = [#tpu.dimension_semantics<parallel>], iteration_bounds = array<i64: 4>, scalar_prefetch = 0 : i64, scratch_operands = 0 : i64, tpu.core_type = #tpu.core_type<tc>, window_params = [{transform_indices = @transform_0, window_bounds = array<i64: 16, 32>}, {transform_indices = @transform_1, window_bounds = array<i64: 16, 1>}, {transform_indices = @transform_2, window_bounds = array<i64: 1, 8, 128>}]} {
    %c0 = arith.constant 0 : index
    %c0_0 = arith.constant 0 : index
    %0 = vector.load %arg1[%c0, %c0_0] : memref<16x32xf32, #tpu.memory_space<vmem>>, vector<16x32xf32>
    %c0_1 = arith.constant 0 : index
    %c0_2 = arith.constant 0 : index
    %1 = vector.load %arg2[%c0_1, %c0_2] : memref<16x1xi32, #tpu.memory_space<vmem>>, vector<16x1xi32>
    %cst = arith.constant dense<0xFF800000> : vector<16xf32>
    %2 = vector.multi_reduction <maximumf>, %0, %cst [1] : vector<16x32xf32> to vector<16xf32>
    %3 = vector.shape_cast %2 : vector<16xf32> to vector<16x1xf32>
    %4 = vector.broadcast %3 : vector<16x1xf32> to vector<16x32xf32>
    %5 = arith.subf %0, %4 : vector<16x32xf32>
    %6 = math.exp %5 : vector<16x32xf32>
    %cst_3 = arith.constant dense<0.000000e+00> : vector<16xf32>
    %7 = vector.multi_reduction <add>, %6, %cst_3 [1] : vector<16x32xf32> to vector<16xf32>
    %8 = vector.shape_cast %7 : vector<16xf32> to vector<16x1xf32>
    %9 = math.log %8 : vector<16x1xf32>
    %10 = arith.addf %9, %3 : vector<16x1xf32>
    %11 = tpu.iota {dimensions = array<i32: 1>} : vector<16x32xi32>
    %12 = vector.broadcast %1 : vector<16x1xi32> to vector<16x32xi32>
    %13 = arith.cmpi eq, %11, %12 : vector<16x32xi32>
    %cst_4 = arith.constant 0.899999976 : f32
    %cst_5 = arith.constant 0.0032258064 : f32
    %14 = vector.broadcast %cst_4 : f32 to vector<16x32xf32>
    %15 = vector.broadcast %cst_5 : f32 to vector<16x32xf32>
    %16 = arith.select %13, %14, %15 : vector<16x32xi1>, vector<16x32xf32>
    %17 = arith.mulf %16, %0 : vector<16x32xf32>
    %cst_6 = arith.constant dense<0.000000e+00> : vector<16xf32>
    %18 = vector.multi_reduction <add>, %17, %cst_6 [1] : vector<16x32xf32> to vector<16xf32>
    %19 = vector.shape_cast %18 : vector<16xf32> to vector<16x1xf32>
    %20 = arith.subf %10, %19 : vector<16x1xf32>
    %c16_i32 = arith.constant 16 : i32
    %21 = arith.muli %arg0, %c16_i32 : i32
    %22 = tpu.iota {dimensions = array<i32: 0>} : vector<16x1xi32>
    %23 = vector.broadcast %21 : i32 to vector<16x1xi32>
    %24 = arith.addi %23, %22 : vector<16x1xi32>
    %c64_i32 = arith.constant 64 : i32
    %25 = vector.broadcast %c64_i32 : i32 to vector<16x1xi32>
    %26 = arith.cmpi slt, %24, %25 : vector<16x1xi32>
    %cst_7 = arith.constant 0.000000e+00 : f32
    %27 = vector.broadcast %cst_7 : f32 to vector<16x1xf32>
    %28 = arith.select %26, %20, %27 : vector<16x1xi1>, vector<16x1xf32>
    %cst_8 = arith.constant dense<0.000000e+00> : vector<1xf32>
    %29 = vector.multi_reduction <add>, %28, %cst_8 [0] : vector<16x1xf32> to vector<1xf32>
    %30 = vector.shape_cast %29 : vector<1xf32> to vector<1x1xf32>
    %31 = vector.shape_cast %30 : vector<1x1xf32> to vector<1x1xf32>
    %32 = vector.broadcast %31 : vector<1x1xf32> to vector<8x128xf32>
    %c0_9 = arith.constant 0 : index
    %c0_10 = arith.constant 0 : index
    %c0_11 = arith.constant 0 : index
    %33 = vector.load %arg3[%c0_9, %c0_10, %c0_11] : memref<1x8x128xf32, #tpu.memory_space<vmem>>, vector<1x8x128xf32>
    %34 = vector.shape_cast %33 : vector<1x8x128xf32> to vector<8x128xf32>
    %35 = vector.shape_cast %32 : vector<8x128xf32> to vector<1x8x128xf32>
    tpu.vector_store %arg3[%c0_9, %c0_10, %c0_11], %35 {strides = array<i32>} : memref<1x8x128xf32, #tpu.memory_space<vmem>>, vector<1x8x128xf32>,
    return
  }
  func.func @transform_0(%arg0: i32) -> (i32, i32) {
    %c0_i32 = arith.constant 0 : i32
    %c0_i32_0 = arith.constant 0 : i32
    return %arg0, %c0_i32 : i32, i32
  }
  func.func @transform_1(%arg0: i32) -> (i32, i32) {
    %c0_i32 = arith.constant 0 : i32
    %c0_i32_0 = arith.constant 0 : i32
    return %arg0, %c0_i32 : i32, i32
  }
  func.func @transform_2(%arg0: i32) -> (i32, i32, i32) {
    %c0_i32 = arith.constant 0 : i32
    %c0_i32_0 = arith.constant 0 : i32
    %c0_i32_1 = arith.constant 0 : i32
    return %arg0, %c0_i32, %c0_i32_0 : i32, i32, i32
  }
}

</mosaic_0001>

<bundles_post_ra>
// kernel: tpu_custom_call.1
= control target key start
LH: loop header
LB: loop body
LE: loop exit
PB: predicated region body
PF: predicated region fallthrough
CT: control target
= control target key end

     0   :  { %7 = vsyncpa [#allocation3], 0  ;;  %s562_s0 = inlined_call_operand.vmem [shape: f32[64,32], index: 0, kind: input, shape index: {}]   ;;  %s563_s1 = inlined_call_operand.vmem [shape: s32[64,1], index: 1, kind: input, shape index: {}]   ;;  %s564_s2 = inlined_call_operand.hbm [shape: f32[4,8,128], index: 2, kind: output, shape index: {}]  }
   0x1   :  { %9 = vsyncpa [#allocation3 + $0x1], 0  ;;  %s466_s9 = smov 0   ;;  %s468_s10 = smov 0  }
   0x2   :  { %s470_s11 = smov 0   ;;  %s472_s12 = smov 0  }
   0x3 LB: > { %s487_s13 = sadd.s32 4294967295, %s446_s12   ;;  %s321_s14 = sadd.s32 4294967294, %s446_s12   ;;  %s446_s12 = sphi %s472_s12, %s570_s12   ;;  %s442_s11 = sphi %s470_s11, %s569_s11   ;;  %s438_s10 = sphi %s468_s10, %s568_s10   ;;  %s434_s9 = sphi %s466_s9, %s567_s9  }
   0x4   : > { %s491_s15 = sadd.s32 1, %s446_s12   ;;  %s74_s16 = sadd.s32 1, %s442_s11 }
   0x5   : > { %s71_s17 = ssub.s32 %s446_s12, %s491_s15  ;;  %p84_p0 = scmp.ne.s32.totalorder %s442_s11, %s438_s10 }
   0x6   : > { %p72_p1 = scmp.eq.s32.totalorder %s71_s17, 0  ;;  %p85_p2 = scmp.eq.s32.totalorder %s487_s13, 3 }
   0x7   : > { %p90_p3 = scmp.ne.s32.totalorder %s438_s10, %s434_s9  ;;  %p91_p4 = scmp.eq.s32.totalorder %s321_s14, 3 }
   0x8   : > { %s502_s18 = scalar_select %p72_p1, %s442_s11, %s74_s16  }
   0x9   : > { %p504_p5 = por %p85_p2, %p84_p0  ;;  %p508_p6 = por %p91_p4, %p90_p3 }
   0xa   : > { %p324_p7 = scmp.ge.s32.totalorder %s446_s12, 1  ;;  %p127_p8 = scmp.lt.s32.totalorder %s446_s12, 5 }
   0xc   : > { %p128_p9 = pnand %p324_p7, %p127_p8 }
   0xd   : > { %s326_s21 = sshll.u32 (!%p128_p9), %s487_s13, 1  ;;  %s330_s29 = sshll.u32 (!%p128_p9), %s487_s13, 4 }
   0xe   : > { %131 = sbr.rel (%p128_p9) target bundleno = 371 (0x173), region = 28  ;;  %p155_p10 = scmp.lt.s32.totalorder (!%p128_p9), %s326_s21, 7 }
   0xf   : > { %s151_s30 = sand.u32 (!%p128_p9), 1, %s438_s10   ;;  %s332_s4 = sshll.u32 (!%p128_p9), %s487_s13, 7 }
  0x10   : > { %s325_s3 = sshll.u32 (!%p128_p9), %s151_s30, 3  ;;  %s248_s14 = scalar_lea.hbm (!%p128_p9), %s564_s2, %s332_s4 }
  0x11   : > { %s153_s5 = scalar_lea.vmem (!%p128_p9), [#allocation2], %s325_s3  ;;  %s237_s16 = scalar_lea.sflag (!%p128_p9), [#allocation3], %s151_s30 }
  0x12   : > { %s250_s6 = sshll.u32 (!%p128_p9), %s153_s5, 4  ;;  %s251_s6 = int_to_ptr.vmem [resolvable:$true] %s250_s6 }
  0x13   : > { %v448_v0 = vmov 0   ;;  %s572_s21 = smov (!%p155_p10, %s326_s21), 7  ;;  %vm170_vm0 = vcmask 261120   ;;  %v195_v10 = vlaneseq  ;;  %v449_v17 = vmov 0.0032258064   ;;  %s386_s17 = scalar_lea.vmem %s251_s6, 128 }
  0x14   : > { %376 = vset.pattern.permute.xlu1 %v448_v0  ;;  %377 = vset.pattern.permute.xlu0 %v448_v0  ;;  %s327_s22 = sshll.u32 %s572_s21, 3  ;;  %v221_v34 = vstv %s330_s29  ;;  %p387_p11 = scmp.ne.s32.totalorder %s251_s6, %s386_s17 }
  0x15   : > { %s158_s25 = scalar_lea.vmem %s562_s0, %s327_s22  ;;  %s164_s28 = scalar_lea.vmem %s563_s1, %s327_s22  ;;  %v196_v15 = vand.u32 127, %v195_v10  ;;  %v219_v30 = vshrl.u32 %v195_v10, 7 }
  0x16   : > { %v166_v1 = vld [vmem:[%s158_s25] sm:$0xff]  ;;  %v167_v2 = vld [vmem:[%s158_s25 + $0x8] sm:$0xff]  ;;  %p388_p12 = pnand %p387_p11, %p504_p5  ;;  %s450_s21 = smov [#allocation2]  }
  0x17   : > { %v168_v3 = vld [vmem:[%s164_s28] sm:$0xff]  ;;  %v171_v4 = vsel %vm170_vm0, %v166_v1, -inf  ;;  %v169_v5 = vld [vmem:[%s164_s28 + $0x8] sm:$0xff]  ;;  %v174_v6 = vsel %vm170_vm0, %v167_v2, -inf  ;;  %v220_v32 = vadd.s32 8, %v219_v30  ;;  %v222_v38 = vadd.s32 %v221_v34, %v219_v30  ;;  %s390_s22 = sshll.u32 %s450_s21, 4  ;;  %s391_s22 = int_to_ptr.vmem [resolvable:$false] %s390_s22 }
  0x18   : > { %198 = vperm.xlu1 %376, %v168_v3   ;;  %172 = vmax.xlane.f32.xlu0 %v171_v4  ;;  %p389_p13 = pneg %p388_p12  ;;  %s392_s13 = scalar_lea.vmem %s391_s22, 256 }
  0x19   : > { %v223_v39 = vadd.s32 %v221_v34, %v220_v32  ;;  %vm224_vm3 = vcmp.lt.s32.totalorder %v222_v38, 64  ;;  %p393_p0 = scmp.lt.s32.totalorder %s251_s6, %s391_s22  ;;  %p394_p1 = scmp.lt.s32.totalorder %s392_s13, %s386_s17 }
  0x1b   : > { %vm225_vm4 = vcmp.lt.s32.totalorder %v223_v39, 64  ;;  %p395_p2 = por %p394_p1, %p393_p0 }
  0x1c   : > { %201 = vperm.xlu1 %376, %v169_v5   ;;  %175 = vmax.xlane.f32.xlu0 %v174_v6 }
  0x1d   : > { %p396_p3 = pnand %p395_p2, %p389_p13 }
  0x93   : > { %v199_v13 = vpop.permute.xlu1 %198 }
  0x94   : > { %vm203_vm1 = vcmp.eq.s32.totalorder %v196_v15, %v199_v13 }
  0x95   : > { %v205_v18 = vsel %vm203_vm1, 0.9, %v449_v17 }
  0x96   : > { %v207_v19 = vmul.f32 %v205_v18, %v166_v1 }
  0x97   : > { %v202_v16 = vpop.permute.xlu1 %201 }
  0x98   : > { %vm204_vm2 = vcmp.eq.s32.totalorder %v196_v15, %v202_v16  ;;  %v209_v23 = vsel %vm170_vm0, %v207_v19, 0.0 }
  0x99   : > { %v206_v21 = vsel %vm204_vm2, 0.9, %v449_v17 }
  0x9a   : > { %v208_v24 = vmul.f32 %v206_v21, %v167_v2 }
  0x9c   : > { %v212_v27 = vsel %vm170_vm0, %v208_v24, 0.0 }
  0xa1   : > { %v173_v7 = vpop.xlane.xlu0 %172 }
  0xa2   : > { %v177_v8 = vsub.f32 %v166_v1, %v173_v7 }
  0xa4   : > { %v179_v9 = vmul.f32 1.442695, %v177_v8 }
  0xa5   : > { %v176_v11 = vpop.xlane.xlu0 %175 }
  0xa6   : > { %378 = vpow2.f32 %v179_v9  ;;  %v178_v12 = vsub.f32 %v167_v2, %v176_v11 }
  0xa8   : > { %v181_v14 = vmul.f32 1.442695, %v178_v12 }
  0xaa   : > { %380 = vpow2.f32 %v181_v14 }
  0xb3   : > { %v379_v20 = vpop.eup %378 }
  0xb4   : > { %v183_v22 = vsel %vm170_vm0, %v379_v20, 0.0 }
  0xb5   : > { %184 = vadd.xlane.f32.xlu0 %v183_v22 }
  0xb7   : > { %v381_v25 = vpop.eup %380 }
  0xb8   : > { %v186_v26 = vsel %vm170_vm0, %v381_v25, 0.0 }
  0xb9   : > { %187 = vadd.xlane.f32.xlu1 %v186_v26  ;;  %210 = vadd.xlane.f32.xlu0 %v209_v23 }
  0xbd   : > { %213 = vadd.xlane.f32.xlu0 %v212_v27 }
 0x13e   : > { %v185_v28 = vpop.xlane.xlu0 %184 }
 0x13f   : > { %382 = vlog2.f32 %v185_v28 }
 0x142   : > { %v188_v29 = vpop.xlane.xlu1 %187  ;;  %v211_v35 = vpop.xlane.xlu0 %210 }
 0x143   : > { %384 = vlog2.f32 %v188_v29 }
 0x146   : > { %v214_v43 = vpop.xlane.xlu0 %213 }
 0x14c   : > { %v383_v31 = vpop.eup %382 }
 0x14d   : > { %v190_v33 = vmul.f32 0.6931472, %v383_v31 }
 0x14f   : > { %v193_v36 = vadd.f32 %v190_v33, %v173_v7 }
 0x150   : > { %v385_v37 = vpop.eup %384 }
 0x151   : > { %v192_v40 = vmul.f32 0.6931472, %v385_v37  ;;  %v215_v41 = vsub.f32 %v193_v36, %v211_v35 }
 0x153   : > { %v194_v42 = vadd.f32 %v192_v40, %v176_v11  ;;  %v226_v45 = vsel %vm224_vm3, %v215_v41, 0.0 }
 0x155   : > { %v216_v44 = vsub.f32 %v194_v42, %v214_v43 }
 0x157   : > { %v227_v46 = vsel %vm225_vm4, %v216_v44, 0.0 }
 0x158   : > { %v228_v47 = vadd.f32 %v227_v46, %v226_v45 }
 0x15a   : > { %v229_v48 = vrot.slane %v228_v47, 4 }
 0x15c   : > { %v230_v49 = vadd.f32 %v229_v48, %v228_v47 }
 0x15e   : > { %v231_v50 = vrot.slane %v230_v49, 2 }
 0x160   : > { %v232_v51 = vadd.f32 %v231_v50, %v230_v49 }
 0x162   : > { %v233_v52 = vrot.slane %v232_v51, 1 }
 0x164   : > { %v234_v53 = vadd.f32 %v233_v52, %v232_v51 }
 0x166   : > { %235 = vst [vmem:[%s153_s5] sm:$0xff] %v234_v53 }
 0x167   : > { %399 = shalt.err (!%p396_p3)
}
 0x168   : > { %s400_s23 = scalar_lea.hbm %s248_s14, 128  ;;  %s404_s26 = scalar_lea.hbm %s564_s2, 512 }
 0x169   : > { %p401_p4 = scmp.ne.s32.totalorder %s248_s14, %s400_s23  ;;  %p405_p9 = scmp.lt.s32.totalorder %s248_s14, %s564_s2 }
 0x16a   : > { %p406_p10 = scmp.lt.s32.totalorder %s404_s26, %s400_s23 }
 0x16b   : > { %p402_p7 = pnand %p401_p4, %p504_p5 }
 0x16c   : > { %p407_p11 = por %p406_p10, %p405_p9 }
 0x16d   : > { %p403_p8 = pneg %p402_p7 }
 0x16f   : > { %p408_p12 = pnand %p407_p11, %p403_p8 }
 0x171   : > { %411 = shalt.err (!%p408_p12)
}
 0x172   : > { %335 = dma.vmem_to_hbm [thread:$0]  (%p504_p5), %s251_s6, 128, %s248_s14, %s237_s16  }
 0x173 PF: > { %p341_p13 = scmp.ge.s32.totalorder %s446_s12, 2  ;;  %s262_s29 = sand.u32 1, %s434_s9  }
 0x174   : > { %s263_s30 = scalar_lea.sflag [#allocation3], %s262_s29 }
 0x175   : > { %p338_p0 = pnand %p341_p13, %p508_p6 }
 0x177   : > { %p339_p1 = pneg %p338_p0 }
 0x179   : > { %429 = dma.done.wait (%p339_p1), %s263_s30, 128  }
 0x17a   : > { %431 = vsyncadd (%p339_p1), %s263_s30, 4294967168  ;;  %p12_p2 = scmp.ge.s32.totalorder %s491_s15, 6   ;;  %s567_s9 = smov %s438_s10 }
 0x17b   : > { %s568_s10 = smov %s442_s11  ;;  %s569_s11 = smov %s502_s18 }
 0x17c   : > { %s570_s12 = smov %s491_s15  ;;  %14 = sbr.rel (!%p12_p2) target bundleno = 3 (0x3), region = 66 }
 0x181   :  { %268 = vsyncpa [#allocation3], 1 }
 0x182   :  { %270 = vsyncpa [#allocation3 + $0x1], 1 }

</bundles_post_ra>
